<compile_context>
chip_gen: v5e
topology: v5e:2x2
jax: 0.10.0
libtpu: 0.0.40
codegen_flags: <defaults>
</compile_context>

<pallas_src>
import jax
import jax.numpy as jnp
from jax.experimental import pallas as pl
from jax.experimental.pallas import tpu as pltpu


def _round_up(x, m):
    return ((x + m - 1) // m) * m


# ---------------------------------------------------------------------------
# Kernel: fused 3-layer MLP. bf16 matmuls on the MXU (f32 accumulation),
# f32 bias + ReLU on the VPU. GradientReversal = identity (forward),
# Dropout = identity (eval mode).
# ---------------------------------------------------------------------------
def _mlp_kernel(x_ref, w1_ref, b1_ref, w2_ref, b2_ref, w3_ref, b3_ref, o_ref):
    # In-kernel cast: features arrive in their producer dtype (no extra HBM
    # materialization in the wrapper); the VPU cast hides under the DMA/MXU.
    x = x_ref[...].astype(jnp.bfloat16)                              # (TB, D)

    # Layer 1: Linear + ReLU (Dropout = identity in eval mode)
    h1 = jnp.dot(x, w1_ref[...], preferred_element_type=jnp.float32)
    h1 = jnp.maximum(h1 + b1_ref[...], 0.0)                          # f32

    # Layer 2: Linear + ReLU (Dropout = identity in eval mode)
    h2 = jnp.dot(h1.astype(jnp.bfloat16), w2_ref[...],
                 preferred_element_type=jnp.float32)
    h2 = jnp.maximum(h2 + b2_ref[...], 0.0)                          # f32

    # Layer 3: Linear (domain logits), lane-dense 128-wide store
    out = jnp.dot(h2.astype(jnp.bfloat16), w3_ref[...],
                  preferred_element_type=jnp.float32)
    o_ref[...] = (out + b3_ref[...]).astype(o_ref.dtype)


# ---------------------------------------------------------------------------
# One-time (cacheable) weight preprocessing — hoisted out of the hot path.
# ---------------------------------------------------------------------------
def prepare_params(params):
    """Cast matmul weights to bf16 and zero-pad the last layer's columns up to
    a lane-dense multiple of 128 (padded logits are exactly 0 and are sliced
    away after the call). Call once and reuse."""
    f32, bf16 = jnp.float32, jnp.bfloat16
    w1, b1 = params["w1"], params["b1"]
    w2, b2 = params["w2"], params["b2"]
    w3, b3 = params["w3"], params["b3"]
    H = w1.shape[1]
    H2 = w2.shape[1]
    N = w3.shape[1]
    N_pad = _round_up(max(N, 128), 128)
    w3_p = jnp.zeros((H2, N_pad), bf16).at[:, :N].set(w3.astype(bf16))
    b3_p = jnp.zeros((1, N_pad), f32).at[:, :N].set(b3.astype(f32).reshape(1, N))
    return {
        "w1": w1.astype(bf16), "b1": b1.astype(f32).reshape(1, H),
        "w2": w2.astype(bf16), "b2": b2.astype(f32).reshape(1, H2),
        "w3": w3_p, "b3": b3_p,
        "num_domains": int(N),
    }


def _vmem_capacity_bytes():
    try:
        cap = getattr(pltpu.get_tpu_info(), "vmem_capacity_bytes", None)
        if cap:
            return int(cap)
    except Exception:
        pass
    return 64 << 20  # conservative fallback: v7x per-TensorCore VMEM


def _vmem_need_bytes(TB, D, H, H2, N_pad, feat_isz, out_isz, weight_bufs):
    feat = 2 * TB * D * feat_isz                   # double-buffered feature tile
    outb = 2 * TB * N_pad * out_isz                # double-buffered output tile
    wts = weight_bufs * ((D * H + H * H2 + H2 * N_pad) * 2
                         + (H + H2 + N_pad) * 4)   # resident weights / biases
    # In-kernel intermediates: x(bf16), h1(f32+bf16), h2(f32+bf16), out(f32).
    interm = TB * (2 * D + 6 * H + 6 * H2 + 4 * N_pad)
    return feat + outb + wts + interm


def _pick_batch_tile(B, D, feat_isz, H, H2, N_pad, out_isz, weight_bufs,
                     vmem_budget, block_cap):
    # Target >= ~2 MiB of feature DMA per grid step (per-step overhead
    # ~0.35 us); floor 512 rows (>=85% of HBM roofline on measured sweeps).
    raw = (2 << 20) // max(D * feat_isz, 1)
    tb_target = min(block_cap, max(512, _round_up(max(raw, 16), 16)))
    if B <= tb_target:
        TB = B                                # single full-dim tile, no padding
    else:
        # Balance tiles so the ragged last tile is nearly full instead of
        # padding the batch up to a tile multiple (avoids wasted DMA/MXU work).
        num_tiles = -(-B // tb_target)
        TB = _round_up(-(-B // num_tiles), 16)
    # Shrink until the VMEM footprint fits the budget.
    while TB > 16 and _vmem_need_bytes(TB, D, H, H2, N_pad, feat_isz, out_isz,
                                       weight_bufs) > vmem_budget:
        TB = max(16, _round_up(TB // 2, 16))
    return TB


def domain_adaptation_head(features, prepared, *, block_b=2048,
                           out_dtype=jnp.float32, single_buffer_weights=True):
    """features (B, input_dim) -> domain logits (B, num_domains)."""
    w1, b1 = prepared["w1"], prepared["b1"]
    w2, b2 = prepared["w2"], prepared["b2"]
    w3, b3 = prepared["w3"], prepared["b3"]
    N = prepared["num_domains"]

    B, D = features.shape
    H = w1.shape[1]
    H2 = w2.shape[1]
    N_pad = w3.shape[1]

    feat_isz = jnp.dtype(features.dtype).itemsize
    out_isz = jnp.dtype(out_dtype).itemsize
    weight_bufs = 1 if single_buffer_weights else 2

    vmem_cap = (_vmem_capacity_bytes() * 7) // 8     # headroom below physical
    TB = _pick_batch_tile(B, D, feat_isz, H, H2, N_pad, out_isz, weight_bufs,
                          vmem_cap, block_b)
    grid_b = pl.cdiv(B, TB)

    need = _vmem_need_bytes(TB, D, H, H2, N_pad, feat_isz, out_isz, weight_bufs)
    # Never clamp below the computed need; generous, but capped below physical.
    vmem_limit = int(min(vmem_cap, max((need * 5) // 4, 32 << 20)))

    rows = grid_b * TB
    flops = 2 * rows * (D * H + H * H2 + H2 * N_pad)
    bytes_accessed = (B * D * feat_isz
                      + (D * H + H * H2 + H2 * N_pad) * 2
                      + (H + H2 + N_pad) * 4
                      + rows * N_pad * out_isz)

    if single_buffer_weights:
        def resident(a):
            # Constant block index -> fetched once and kept VMEM-resident;
            # single-buffered to halve the resident footprint (v7x: 64 MiB).
            return pl.BlockSpec(a.shape, lambda i: (0, 0),
                                pipeline_mode=pl.Buffered(1))
    else:
        def resident(a):
            return pl.BlockSpec(a.shape, lambda i: (0, 0))

    out = pl.pallas_call(
        _mlp_kernel,
        out_shape=jax.ShapeDtypeStruct((B, N_pad), out_dtype),
        grid=(grid_b,),
        in_specs=[
            # Features tiled over the batch; default double-buffering overlaps
            # the next tile's DMA with this tile's matmuls.
            pl.BlockSpec((TB, D), lambda i: (i, 0)),
            resident(w1), resident(b1),
            resident(w2), resident(b2),
            resident(w3), resident(b3),
        ],
        out_specs=pl.BlockSpec((TB, N_pad), lambda i: (i, 0)),
        compiler_params=pltpu.CompilerParams(
            dimension_semantics=("parallel",),    # batch tiles split across TCs
            vmem_limit_bytes=vmem_limit,
        ),
        cost_estimate=pl.CostEstimate(flops=int(flops), transcendentals=0,
                                      bytes_accessed=int(bytes_accessed)),
    )(features, w1, b1, w2, b2, w3, b3)

    # Drop the zero lane padding (no batch padding was added, so no row slice).
    return out[:, :N]


def init_params(key, input_dim, num_domains, hidden_dim=256):
    """Deterministic synthetic parameters (same shapes as the PyTorch module)."""
    k1, k2, k3, k4, k5, k6 = jax.random.split(key, 6)
    h2 = hidden_dim // 2
    # Stored as (in, out): transpose of PyTorch nn.Linear's (out, in) weight.
    return {
        "w1": jax.random.normal(k1, (input_dim, hidden_dim), jnp.float32) * 0.05,
        "b1": jax.random.normal(k2, (1, hidden_dim), jnp.float32) * 0.01,
        "w2": jax.random.normal(k3, (hidden_dim, h2), jnp.float32) * 0.05,
        "b2": jax.random.normal(k4, (1, h2), jnp.float32) * 0.01,
        "w3": jax.random.normal(k5, (h2, num_domains), jnp.float32) * 0.05,
        "b3": jax.random.normal(k6, (1, num_domains), jnp.float32) * 0.01,
    }


def reference_forward(features, params):
    """Pure-JAX f32 reference (gradient reversal is identity in forward)."""
    h1 = jnp.maximum(features @ params["w1"] + params["b1"], 0.0)
    h2 = jnp.maximum(h1 @ params["w2"] + params["b2"], 0.0)
    return h2 @ params["w3"] + params["b3"]


if __name__ == "__main__":
    # Small, forward-consistent shapes: batch=2, input_dim=32,
    # hidden_dim=32 (-> hidden//2=16), num_domains=4.
    B, INPUT_DIM, HIDDEN_DIM, NUM_DOMAINS = 2, 32, 32, 4

    key = jax.random.PRNGKey(0)
    k_x, k_p = jax.random.split(key)

    features = jax.random.normal(k_x, (B, INPUT_DIM), jnp.float32)
    params = init_params(k_p, INPUT_DIM, NUM_DOMAINS, HIDDEN_DIM)

    # One-time weight preprocessing, hoisted out of the per-call hot path.
    prepared = prepare_params(params)

    # TODO(synk): training-mode Dropout (random masking) and gradient-reversal
    # backward are not implemented; this is the eval-mode forward pass.

    try:
        out = domain_adaptation_head(features, prepared)
    except Exception:
        # Fallback if this jax version rejects single-buffered resident blocks.
        out = domain_adaptation_head(features, prepared,
                                     single_buffer_weights=False)
    out = jax.block_until_ready(out)

    ref = reference_forward(features, params)
    assert out.shape == (B, NUM_DOMAINS)
    # bf16 matmul operands with f32 accumulation -> loosened tolerance vs f32 ref.
    assert jnp.allclose(out, ref, atol=2e-2, rtol=2e-2), "mismatch vs reference"

    print("KERNEL_OK")
</pallas_src>

<mosaic_0001>
module attributes {stable_mosaic.version = 11 : i64} {
  func.func @_mlp_kernel(%arg0: i32, %arg1: memref<2x32xf32, #tpu.memory_space<vmem>>, %arg2: memref<32x32xbf16, #tpu.memory_space<vmem>>, %arg3: memref<1x32xf32, #tpu.memory_space<vmem>>, %arg4: memref<32x16xbf16, #tpu.memory_space<vmem>>, %arg5: memref<1x16xf32, #tpu.memory_space<vmem>>, %arg6: memref<16x128xbf16, #tpu.memory_space<vmem>>, %arg7: memref<1x128xf32, #tpu.memory_space<vmem>>, %arg8: memref<2x128xf32, #tpu.memory_space<vmem>>) attributes {dimension_semantics = [#tpu.dimension_semantics<parallel>], iteration_bounds = array<i64: 1>, scalar_prefetch = 0 : i64, scratch_operands = 0 : i64, tpu.core_type = #tpu.core_type<tc>, window_params = [{transform_indices = @transform_0, window_bounds = array<i64: 2, 32>}, {pipeline_mode = #tpu.pipeline_mode<synchronous>, transform_indices = @transform_1, window_bounds = array<i64: 32, 32>}, {pipeline_mode = #tpu.pipeline_mode<synchronous>, transform_indices = @transform_2, window_bounds = array<i64: 1, 32>}, {pipeline_mode = #tpu.pipeline_mode<synchronous>, transform_indices = @transform_3, window_bounds = array<i64: 32, 16>}, {pipeline_mode = #tpu.pipeline_mode<synchronous>, transform_indices = @transform_4, window_bounds = array<i64: 1, 16>}, {pipeline_mode = #tpu.pipeline_mode<synchronous>, transform_indices = @transform_5, window_bounds = array<i64: 16, 128>}, {pipeline_mode = #tpu.pipeline_mode<synchronous>, transform_indices = @transform_6, window_bounds = array<i64: 1, 128>}, {transform_indices = @transform_7, window_bounds = array<i64: 2, 128>}]} {
    %c0 = arith.constant 0 : index
    %c0_0 = arith.constant 0 : index
    %0 = vector.load %arg1[%c0, %c0_0] : memref<2x32xf32, #tpu.memory_space<vmem>>, vector<2x32xf32>
    %1 = arith.truncf %0 : vector<2x32xf32> to vector<2x32xbf16>
    %c0_1 = arith.constant 0 : index
    %c0_2 = arith.constant 0 : index
    %2 = vector.load %arg2[%c0_1, %c0_2] : memref<32x32xbf16, #tpu.memory_space<vmem>>, vector<32x32xbf16>
    %cst = arith.constant dense<0.000000e+00> : vector<2x32xf32>
    %3 = tpu.matmul %1, %2, %cst {dimension_numbers = #tpu.dot_dimension_numbers<[1], [0], [0], [1], [0, 0, 1, 1], [], []>} : vector<2x32xbf16>, vector<32x32xbf16>, vector<2x32xf32> -> vector<2x32xf32>
    %c0_3 = arith.constant 0 : index
    %c0_4 = arith.constant 0 : index
    %4 = vector.load %arg3[%c0_3, %c0_4] : memref<1x32xf32, #tpu.memory_space<vmem>>, vector<1x32xf32>
    %5 = vector.broadcast %4 : vector<1x32xf32> to vector<2x32xf32>
    %6 = arith.addf %3, %5 : vector<2x32xf32>
    %cst_5 = arith.constant 0.000000e+00 : f32
    %7 = vector.broadcast %cst_5 : f32 to vector<2x32xf32>
    %8 = arith.maximumf %6, %7 : vector<2x32xf32>
    %9 = arith.truncf %8 : vector<2x32xf32> to vector<2x32xbf16>
    %c0_6 = arith.constant 0 : index
    %c0_7 = arith.constant 0 : index
    %10 = vector.load %arg4[%c0_6, %c0_7] : memref<32x16xbf16, #tpu.memory_space<vmem>>, vector<32x16xbf16>
    %cst_8 = arith.constant dense<0.000000e+00> : vector<2x16xf32>
    %11 = tpu.matmul %9, %10, %cst_8 {dimension_numbers = #tpu.dot_dimension_numbers<[1], [0], [0], [1], [0, 0, 1, 1], [], []>} : vector<2x32xbf16>, vector<32x16xbf16>, vector<2x16xf32> -> vector<2x16xf32>
    %c0_9 = arith.constant 0 : index
    %c0_10 = arith.constant 0 : index
    %12 = vector.load %arg5[%c0_9, %c0_10] : memref<1x16xf32, #tpu.memory_space<vmem>>, vector<1x16xf32>
    %13 = vector.broadcast %12 : vector<1x16xf32> to vector<2x16xf32>
    %14 = arith.addf %11, %13 : vector<2x16xf32>
    %cst_11 = arith.constant 0.000000e+00 : f32
    %15 = vector.broadcast %cst_11 : f32 to vector<2x16xf32>
    %16 = arith.maximumf %14, %15 : vector<2x16xf32>
    %17 = arith.truncf %16 : vector<2x16xf32> to vector<2x16xbf16>
    %c0_12 = arith.constant 0 : index
    %c0_13 = arith.constant 0 : index
    %18 = vector.load %arg6[%c0_12, %c0_13] : memref<16x128xbf16, #tpu.memory_space<vmem>>, vector<16x128xbf16>
    %cst_14 = arith.constant dense<0.000000e+00> : vector<2x128xf32>
    %19 = tpu.matmul %17, %18, %cst_14 {dimension_numbers = #tpu.dot_dimension_numbers<[1], [0], [0], [1], [0, 0, 1, 1], [], []>} : vector<2x16xbf16>, vector<16x128xbf16>, vector<2x128xf32> -> vector<2x128xf32>
    %c0_15 = arith.constant 0 : index
    %c0_16 = arith.constant 0 : index
    %20 = vector.load %arg7[%c0_15, %c0_16] : memref<1x128xf32, #tpu.memory_space<vmem>>, vector<1x128xf32>
    %21 = vector.broadcast %20 : vector<1x128xf32> to vector<2x128xf32>
    %22 = arith.addf %19, %21 : vector<2x128xf32>
    %c0_17 = arith.constant 0 : index
    %c0_18 = arith.constant 0 : index
    %23 = vector.load %arg8[%c0_17, %c0_18] : memref<2x128xf32, #tpu.memory_space<vmem>>, vector<2x128xf32>
    tpu.vector_store %arg8[%c0_17, %c0_18], %22 {strides = array<i32>} : memref<2x128xf32, #tpu.memory_space<vmem>>, vector<2x128xf32>,
    return
  }
  func.func @transform_0(%arg0: i32) -> (i32, i32) {
    %c0_i32 = arith.constant 0 : i32
    %c0_i32_0 = arith.constant 0 : i32
    return %arg0, %c0_i32 : i32, i32
  }
  func.func @transform_1(%arg0: i32) -> (i32, i32) {
    %c0_i32 = arith.constant 0 : i32
    %c0_i32_0 = arith.constant 0 : i32
    %c0_i32_1 = arith.constant 0 : i32
    return %c0_i32, %c0_i32_0 : i32, i32
  }
  func.func @transform_2(%arg0: i32) -> (i32, i32) {
    %c0_i32 = arith.constant 0 : i32
    %c0_i32_0 = arith.constant 0 : i32
    %c0_i32_1 = arith.constant 0 : i32
    return %c0_i32, %c0_i32_0 : i32, i32
  }
  func.func @transform_3(%arg0: i32) -> (i32, i32) {
    %c0_i32 = arith.constant 0 : i32
    %c0_i32_0 = arith.constant 0 : i32
    %c0_i32_1 = arith.constant 0 : i32
    return %c0_i32, %c0_i32_0 : i32, i32
  }
  func.func @transform_4(%arg0: i32) -> (i32, i32) {
    %c0_i32 = arith.constant 0 : i32
    %c0_i32_0 = arith.constant 0 : i32
    %c0_i32_1 = arith.constant 0 : i32
    return %c0_i32, %c0_i32_0 : i32, i32
  }
  func.func @transform_5(%arg0: i32) -> (i32, i32) {
    %c0_i32 = arith.constant 0 : i32
    %c0_i32_0 = arith.constant 0 : i32
    %c0_i32_1 = arith.constant 0 : i32
    return %c0_i32, %c0_i32_0 : i32, i32
  }
  func.func @transform_6(%arg0: i32) -> (i32, i32) {
    %c0_i32 = arith.constant 0 : i32
    %c0_i32_0 = arith.constant 0 : i32
    %c0_i32_1 = arith.constant 0 : i32
    return %c0_i32, %c0_i32_0 : i32, i32
  }
  func.func @transform_7(%arg0: i32) -> (i32, i32) {
    %c0_i32 = arith.constant 0 : i32
    %c0_i32_0 = arith.constant 0 : i32
    return %arg0, %c0_i32 : i32, i32
  }
}

module attributes {stable_mosaic.version = 11 : i64} {
  func.func @_mlp_kernel(%arg0: i32, %arg1: memref<2x32xf32, #tpu.memory_space<vmem>>, %arg2: memref<32x32xbf16, #tpu.memory_space<vmem>>, %arg3: memref<1x32xf32, #tpu.memory_space<vmem>>, %arg4: memref<32x16xbf16, #tpu.memory_space<vmem>>, %arg5: memref<1x16xf32, #tpu.memory_space<vmem>>, %arg6: memref<16x128xbf16, #tpu.memory_space<vmem>>, %arg7: memref<1x128xf32, #tpu.memory_space<vmem>>, %arg8: memref<2x128xf32, #tpu.memory_space<vmem>>) attributes {dimension_semantics = [#tpu.dimension_semantics<parallel>], iteration_bounds = array<i64: 1>, scalar_prefetch = 0 : i64, scratch_operands = 0 : i64, tpu.core_type = #tpu.core_type<tc>, window_params = [{transform_indices = @transform_0, window_bounds = array<i64: 2, 32>}, {pipeline_mode = #tpu.pipeline_mode<synchronous>, transform_indices = @transform_1, window_bounds = array<i64: 32, 32>}, {pipeline_mode = #tpu.pipeline_mode<synchronous>, transform_indices = @transform_2, window_bounds = array<i64: 1, 32>}, {pipeline_mode = #tpu.pipeline_mode<synchronous>, transform_indices = @transform_3, window_bounds = array<i64: 32, 16>}, {pipeline_mode = #tpu.pipeline_mode<synchronous>, transform_indices = @transform_4, window_bounds = array<i64: 1, 16>}, {pipeline_mode = #tpu.pipeline_mode<synchronous>, transform_indices = @transform_5, window_bounds = array<i64: 16, 128>}, {pipeline_mode = #tpu.pipeline_mode<synchronous>, transform_indices = @transform_6, window_bounds = array<i64: 1, 128>}, {transform_indices = @transform_7, window_bounds = array<i64: 2, 128>}]} {
    %c0 = arith.constant 0 : index
    %c0_0 = arith.constant 0 : index
    %0 = vector.load %arg1[%c0, %c0_0] : memref<2x32xf32, #tpu.memory_space<vmem>>, vector<2x32xf32>
    %1 = arith.truncf %0 : vector<2x32xf32> to vector<2x32xbf16>
    %c0_1 = arith.constant 0 : index
    %c0_2 = arith.constant 0 : index
    %2 = vector.load %arg2[%c0_1, %c0_2] : memref<32x32xbf16, #tpu.memory_space<vmem>>, vector<32x32xbf16>
    %cst = arith.constant dense<0.000000e+00> : vector<2x32xf32>
    %3 = tpu.matmul %1, %2, %cst {dimension_numbers = #tpu.dot_dimension_numbers<[1], [0], [0], [1], [0, 0, 1, 1], [], []>} : vector<2x32xbf16>, vector<32x32xbf16>, vector<2x32xf32> -> vector<2x32xf32>
    %c0_3 = arith.constant 0 : index
    %c0_4 = arith.constant 0 : index
    %4 = vector.load %arg3[%c0_3, %c0_4] : memref<1x32xf32, #tpu.memory_space<vmem>>, vector<1x32xf32>
    %5 = vector.broadcast %4 : vector<1x32xf32> to vector<2x32xf32>
    %6 = arith.addf %3, %5 : vector<2x32xf32>
    %cst_5 = arith.constant 0.000000e+00 : f32
    %7 = vector.broadcast %cst_5 : f32 to vector<2x32xf32>
    %8 = arith.maximumf %6, %7 : vector<2x32xf32>
    %9 = arith.truncf %8 : vector<2x32xf32> to vector<2x32xbf16>
    %c0_6 = arith.constant 0 : index
    %c0_7 = arith.constant 0 : index
    %10 = vector.load %arg4[%c0_6, %c0_7] : memref<32x16xbf16, #tpu.memory_space<vmem>>, vector<32x16xbf16>
    %cst_8 = arith.constant dense<0.000000e+00> : vector<2x16xf32>
    %11 = tpu.matmul %9, %10, %cst_8 {dimension_numbers = #tpu.dot_dimension_numbers<[1], [0], [0], [1], [0, 0, 1, 1], [], []>} : vector<2x32xbf16>, vector<32x16xbf16>, vector<2x16xf32> -> vector<2x16xf32>
    %c0_9 = arith.constant 0 : index
    %c0_10 = arith.constant 0 : index
    %12 = vector.load %arg5[%c0_9, %c0_10] : memref<1x16xf32, #tpu.memory_space<vmem>>, vector<1x16xf32>
    %13 = vector.broadcast %12 : vector<1x16xf32> to vector<2x16xf32>
    %14 = arith.addf %11, %13 : vector<2x16xf32>
    %cst_11 = arith.constant 0.000000e+00 : f32
    %15 = vector.broadcast %cst_11 : f32 to vector<2x16xf32>
    %16 = arith.maximumf %14, %15 : vector<2x16xf32>
    %17 = arith.truncf %16 : vector<2x16xf32> to vector<2x16xbf16>
    %c0_12 = arith.constant 0 : index
    %c0_13 = arith.constant 0 : index
    %18 = vector.load %arg6[%c0_12, %c0_13] : memref<16x128xbf16, #tpu.memory_space<vmem>>, vector<16x128xbf16>
    %cst_14 = arith.constant dense<0.000000e+00> : vector<2x128xf32>
    %19 = tpu.matmul %17, %18, %cst_14 {dimension_numbers = #tpu.dot_dimension_numbers<[1], [0], [0], [1], [0, 0, 1, 1], [], []>} : vector<2x16xbf16>, vector<16x128xbf16>, vector<2x128xf32> -> vector<2x128xf32>
    %c0_15 = arith.constant 0 : index
    %c0_16 = arith.constant 0 : index
    %20 = vector.load %arg7[%c0_15, %c0_16] : memref<1x128xf32, #tpu.memory_space<vmem>>, vector<1x128xf32>
    %21 = vector.broadcast %20 : vector<1x128xf32> to vector<2x128xf32>
    %22 = arith.addf %19, %21 : vector<2x128xf32>
    %c0_17 = arith.constant 0 : index
    %c0_18 = arith.constant 0 : index
    %23 = vector.load %arg8[%c0_17, %c0_18] : memref<2x128xf32, #tpu.memory_space<vmem>>, vector<2x128xf32>
    tpu.vector_store %arg8[%c0_17, %c0_18], %22 {strides = array<i32>} : memref<2x128xf32, #tpu.memory_space<vmem>>, vector<2x128xf32>,
    return
  }
  func.func @transform_0(%arg0: i32) -> (i32, i32) {
    %c0_i32 = arith.constant 0 : i32
    %c0_i32_0 = arith.constant 0 : i32
    return %arg0, %c0_i32 : i32, i32
  }
  func.func @transform_1(%arg0: i32) -> (i32, i32) {
    %c0_i32 = arith.constant 0 : i32
    %c0_i32_0 = arith.constant 0 : i32
    %c0_i32_1 = arith.constant 0 : i32
    return %c0_i32, %c0_i32_0 : i32, i32
  }
  func.func @transform_2(%arg0: i32) -> (i32, i32) {
    %c0_i32 = arith.constant 0 : i32
    %c0_i32_0 = arith.constant 0 : i32
    %c0_i32_1 = arith.constant 0 : i32
    return %c0_i32, %c0_i32_0 : i32, i32
  }
  func.func @transform_3(%arg0: i32) -> (i32, i32) {
    %c0_i32 = arith.constant 0 : i32
    %c0_i32_0 = arith.constant 0 : i32
    %c0_i32_1 = arith.constant 0 : i32
    return %c0_i32, %c0_i32_0 : i32, i32
  }
  func.func @transform_4(%arg0: i32) -> (i32, i32) {
    %c0_i32 = arith.constant 0 : i32
    %c0_i32_0 = arith.constant 0 : i32
    %c0_i32_1 = arith.constant 0 : i32
    return %c0_i32, %c0_i32_0 : i32, i32
  }
  func.func @transform_5(%arg0: i32) -> (i32, i32) {
    %c0_i32 = arith.constant 0 : i32
    %c0_i32_0 = arith.constant 0 : i32
    %c0_i32_1 = arith.constant 0 : i32
    return %c0_i32, %c0_i32_0 : i32, i32
  }
  func.func @transform_6(%arg0: i32) -> (i32, i32) {
    %c0_i32 = arith.constant 0 : i32
    %c0_i32_0 = arith.constant 0 : i32
    %c0_i32_1 = arith.constant 0 : i32
    return %c0_i32, %c0_i32_0 : i32, i32
  }
  func.func @transform_7(%arg0: i32) -> (i32, i32) {
    %c0_i32 = arith.constant 0 : i32
    %c0_i32_0 = arith.constant 0 : i32
    return %arg0, %c0_i32 : i32, i32
  }
}

</mosaic_0001>

<bundles_post_ra>
// kernel: tpu_custom_call.1
= control target key start
LH: loop header
LB: loop body
LE: loop exit
PB: predicated region body
PF: predicated region fallthrough
CT: control target
= control target key end

     0   :  { %12 = vsyncpa [#allocation3], 0  ;;  %s325_s0 = inlined_call_operand.hbm [shape: f32[2,32], index: 0, kind: input, shape index: {}]   ;;  %s326_s1 = inlined_call_operand.vmem [shape: bf16[32,32], index: 1, kind: input, shape index: {}]   ;;  %s327_s2 = inlined_call_operand.vmem [shape: f32[1,32], index: 2, kind: input, shape index: {}]   ;;  %s328_s3 = inlined_call_operand.vmem [shape: bf16[32,16], index: 3, kind: input, shape index: {}]   ;;  %s329_s4 = inlined_call_operand.vmem [shape: f32[1,16], index: 4, kind: input, shape index: {}]   ;;  %s330_s5 = inlined_call_operand.vmem [shape: bf16[16,128], index: 5, kind: input, shape index: {}]   ;;  %s331_s6 = inlined_call_operand.vmem [shape: f32[1,128], index: 6, kind: input, shape index: {}]   ;;  %s332_s7 = inlined_call_operand.hbm [shape: f32[2,128], index: 7, kind: output, shape index: {}]  }
   0x1   :  { %13 = vsyncpa [#allocation4], 0  ;;  %s19_s26 = sshll.u32 %s325_s0, 4  ;;  %s253_s27 = smov [#allocation2]   ;;  %s20_s26 = int_to_ptr.hbm [resolvable:$true] %s19_s26 }
   0x2   :  { %s21_s28 = sshll.u32 %s253_s27, 4  ;;  %s22_s28 = int_to_ptr.vmem [resolvable:$true] %s21_s28 }
   0x3   :  { %24 = dma.hbm_to_vmem [thread:$0]  %s20_s26, 32, %s22_s28, [#allocation3]  }
   0x4   :  { %249 = dma.done.wait [#allocation3], 32  }
   0x5   :  { %250 = vsyncadd [#allocation3], 4294967264  ;;  %v192_v0 = vld [vmem:[%s326_s1 + $0x8] sm:$0xff]  ;;  %v191_v1 = vld [vmem:[%s326_s1] sm:$0xff]  ;;  %vm64_vm0 = vcmask 261120   ;;  %vm133_vm1 = vcmask 130048  }
   0x6   :  { %74 = vmatpush.bf16.msra.mxu0 %v192_v0  ;;  %v42_v2 = vld [vmem:[#allocation2] sm:$0x3]  ;;  %v194_v4 = vld [vmem:[%s328_s3 + $0x8] sm:$0xff]  ;;  %s254_s18 = smov [#allocation5]   ;;  %s158_s21 = sshll.u32 %s332_s7, 4  ;;  %s159_s21 = int_to_ptr.hbm [resolvable:$true] %s158_s21 }
   0x7   :  { %v43_v3 = vpack.c.bf16 %v42_v2, %v42_v2  ;;  %112 = vmatpush.bf16.msra.mxu1 %v194_v4  ;;  %v193_v5 = vld [vmem:[%s328_s3] sm:$0xff]  ;;  %s156_s19 = sshll.u32 %s254_s18, 4  ;;  %s157_s19 = int_to_ptr.vmem [resolvable:$true] %s156_s19 }
   0x8   :  { %v198_v6 = vld [vmem:[%s327_s2] ss:$0 sm:$0xff] }
   0x9   :  { %v195_v12 = vld [vmem:[%s330_s5] sm:$0xff] }
   0xa   :  { %75 = vmatpush.bf16.msra.mxu0 %v191_v1  ;;  %144 = vmatpush.bf16.msra.mxu2 %v195_v12  ;;  %v199_v13 = vld [vmem:[%s329_s4] ss:$0 sm:$0xff] }
   0xb   :  { %113 = vmatpush.bf16.msra.mxu1 %v193_v5  ;;  %v200_v19 = vld [vmem:[%s331_s6] ss:$0 sm:$0xff] }
   0xd   :  { %176 = vmatmul.msk.bf16.vlgmr.msra.gmra.mxu0 %vm64_vm0, %v43_v3 }
  0x8a   :  { %v77_v7 = vpop.f32.mrf.mxu0 }
  0x8b   :  { %v78_v8 = vadd.f32 %v198_v6, %v77_v7 }
  0x8d   :  { %v81_v9 = vmax.f32 %v78_v8, 0.0 }
  0x8f   :  { %v82_v10 = vpack.c.bf16 %v81_v9, %v81_v9 }
  0x91   :  { %185 = vmatmul.msk.bf16.vlgmr.msra.gmra.mxu1 %vm64_vm0, %v82_v10 }
  0x92   :  { %v79_v11 = vpop.f32.mrf.mxu0 }
 0x10e   :  { %v115_v14 = vpop.f32.mrf.mxu1 }
 0x10f   :  { %v116_v15 = vadd.f32 %v199_v13, %v115_v14 }
 0x111   :  { %v119_v16 = vmax.f32 %v116_v15, 0.0 }
 0x113   :  { %v120_v17 = vpack.c.bf16 %v119_v16, %v119_v16 }
 0x115   :  { %190 = vmatmul.msk.bf16.vlgmr.msra.gmra.mxu2 %vm133_vm1, %v120_v17 }
 0x116   :  { %v117_v18 = vpop.f32.mrf.mxu1 }
 0x198   :  { %v146_v20 = vpop.f32.mrf.mxu2 }
 0x199   :  { %v147_v21 = vadd.f32 %v200_v19, %v146_v20 }
 0x19b   :  { %150 = vst [vmem:[#allocation5] sm:$0x3] %v147_v21 }
 0x19c   :  { %161 = dma.vmem_to_hbm [thread:$0]  %s157_s19, 32, %s159_s21, [#allocation4]  }
 0x1a0   :  { %v148_v22 = vpop.f32.mrf.mxu2 }
 0x1a1   :  { %251 = dma.done.wait [#allocation4], 32  }
 0x1a2   :  { %252 = vsyncadd [#allocation4], 4294967264 }
 0x1a3   :  { %166 = vsyncpa [#allocation3], 1 }
 0x1a4   :  { %167 = vsyncpa [#allocation4], 1 }

// kernel: tpu_custom_call.1
= control target key start
LH: loop header
LB: loop body
LE: loop exit
PB: predicated region body
PF: predicated region fallthrough
CT: control target
= control target key end

     0   :  { %12 = vsyncpa [#allocation3], 0  ;;  %s325_s0 = inlined_call_operand.hbm [shape: f32[2,32], index: 0, kind: input, shape index: {}]   ;;  %s326_s1 = inlined_call_operand.vmem [shape: bf16[32,32], index: 1, kind: input, shape index: {}]   ;;  %s327_s2 = inlined_call_operand.vmem [shape: f32[1,32], index: 2, kind: input, shape index: {}]   ;;  %s328_s3 = inlined_call_operand.vmem [shape: bf16[32,16], index: 3, kind: input, shape index: {}]   ;;  %s329_s4 = inlined_call_operand.vmem [shape: f32[1,16], index: 4, kind: input, shape index: {}]   ;;  %s330_s5 = inlined_call_operand.vmem [shape: bf16[16,128], index: 5, kind: input, shape index: {}]   ;;  %s331_s6 = inlined_call_operand.vmem [shape: f32[1,128], index: 6, kind: input, shape index: {}]   ;;  %s332_s7 = inlined_call_operand.hbm [shape: f32[2,128], index: 7, kind: output, shape index: {}]  }
   0x1   :  { %13 = vsyncpa [#allocation4], 0  ;;  %s19_s26 = sshll.u32 %s325_s0, 4  ;;  %s253_s27 = smov [#allocation2]   ;;  %s20_s26 = int_to_ptr.hbm [resolvable:$true] %s19_s26 }
   0x2   :  { %s21_s28 = sshll.u32 %s253_s27, 4  ;;  %s22_s28 = int_to_ptr.vmem [resolvable:$true] %s21_s28 }
   0x3   :  { %24 = dma.hbm_to_vmem [thread:$0]  %s20_s26, 32, %s22_s28, [#allocation3]  }
   0x4   :  { %249 = dma.done.wait [#allocation3], 32  }
   0x5   :  { %250 = vsyncadd [#allocation3], 4294967264  ;;  %v192_v0 = vld [vmem:[%s326_s1 + $0x8] sm:$0xff]  ;;  %v191_v1 = vld [vmem:[%s326_s1] sm:$0xff]  ;;  %vm64_vm0 = vcmask 261120   ;;  %vm133_vm1 = vcmask 130048  }
   0x6   :  { %74 = vmatpush.bf16.msra.mxu0 %v192_v0  ;;  %v42_v2 = vld [vmem:[#allocation2] sm:$0x3]  ;;  %v194_v4 = vld [vmem:[%s328_s3 + $0x8] sm:$0xff]  ;;  %s254_s18 = smov [#allocation5]   ;;  %s158_s21 = sshll.u32 %s332_s7, 4  ;;  %s159_s21 = int_to_ptr.hbm [resolvable:$true] %s158_s21 }
   0x7   :  { %v43_v3 = vpack.c.bf16 %v42_v2, %v42_v2  ;;  %112 = vmatpush.bf16.msra.mxu1 %v194_v4  ;;  %v193_v5 = vld [vmem:[%s328_s3] sm:$0xff]  ;;  %s156_s19 = sshll.u32 %s254_s18, 4  ;;  %s157_s19 = int_to_ptr.vmem [resolvable:$true] %s156_s19 }
   0x8   :  { %v198_v6 = vld [vmem:[%s327_s2] ss:$0 sm:$0xff] }
   0x9   :  { %v195_v12 = vld [vmem:[%s330_s5] sm:$0xff] }
   0xa   :  { %75 = vmatpush.bf16.msra.mxu0 %v191_v1  ;;  %144 = vmatpush.bf16.msra.mxu2 %v195_v12  ;;  %v199_v13 = vld [vmem:[%s329_s4] ss:$0 sm:$0xff] }
   0xb   :  { %113 = vmatpush.bf16.msra.mxu1 %v193_v5  ;;  %v200_v19 = vld [vmem:[%s331_s6] ss:$0 sm:$0xff] }
   0xd   :  { %176 = vmatmul.msk.bf16.vlgmr.msra.gmra.mxu0 %vm64_vm0, %v43_v3 }
  0x8a   :  { %v77_v7 = vpop.f32.mrf.mxu0 }
  0x8b   :  { %v78_v8 = vadd.f32 %v198_v6, %v77_v7 }
  0x8d   :  { %v81_v9 = vmax.f32 %v78_v8, 0.0 }
  0x8f   :  { %v82_v10 = vpack.c.bf16 %v81_v9, %v81_v9 }
  0x91   :  { %185 = vmatmul.msk.bf16.vlgmr.msra.gmra.mxu1 %vm64_vm0, %v82_v10 }
  0x92   :  { %v79_v11 = vpop.f32.mrf.mxu0 }
 0x10e   :  { %v115_v14 = vpop.f32.mrf.mxu1 }
 0x10f   :  { %v116_v15 = vadd.f32 %v199_v13, %v115_v14 }
 0x111   :  { %v119_v16 = vmax.f32 %v116_v15, 0.0 }
 0x113   :  { %v120_v17 = vpack.c.bf16 %v119_v16, %v119_v16 }
 0x115   :  { %190 = vmatmul.msk.bf16.vlgmr.msra.gmra.mxu2 %vm133_vm1, %v120_v17 }
 0x116   :  { %v117_v18 = vpop.f32.mrf.mxu1 }
 0x198   :  { %v146_v20 = vpop.f32.mrf.mxu2 }
 0x199   :  { %v147_v21 = vadd.f32 %v200_v19, %v146_v20 }
 0x19b   :  { %150 = vst [vmem:[#allocation5] sm:$0x3] %v147_v21 }
 0x19c   :  { %161 = dma.vmem_to_hbm [thread:$0]  %s157_s19, 32, %s159_s21, [#allocation4]  }
 0x1a0   :  { %v148_v22 = vpop.f32.mrf.mxu2 }
 0x1a1   :  { %251 = dma.done.wait [#allocation4], 32  }
 0x1a2   :  { %252 = vsyncadd [#allocation4], 4294967264 }
 0x1a3   :  { %166 = vsyncpa [#allocation3], 1 }
 0x1a4   :  { %167 = vsyncpa [#allocation4], 1 }

</bundles_post_ra>
